<compile_context>
chip_gen: v6e
topology: v6e:2x2x1
jax: 0.10.0
libtpu: 0.0.40
codegen_flags: <defaults>
</compile_context>

<pallas_src>
import functools

import numpy as np
import jax
import jax.numpy as jnp
from jax import lax
from jax.experimental import pallas as pl
from jax.experimental.pallas import tpu as pltpu


# ----------------------------------------------------------------------------
# deterministic "parameter" construction (no learned weights in this module)
# ----------------------------------------------------------------------------
def _band_matrix(n, r, dtype):
    """B[i, j] = 1 iff |i - j| <= r (box window, clipped at the borders)."""
    idx = np.arange(n)
    return jnp.asarray((np.abs(idx[:, None] - idx[None, :]) <= r), dtype=dtype)


def _round_up(x, m):
    return ((x + m - 1) // m) * m


# ----------------------------------------------------------------------------
# Pallas kernel: one block of P planes per grid step, two 2-D MXU matmuls per
# plane (no batched-broadcast of the band matrices).
# ----------------------------------------------------------------------------
def _box_kernel(bh_ref, bw_ref, x_ref, o_ref, *, unroll):
    p, _, _ = x_ref.shape
    op_dtype = bh_ref.dtype
    bh = bh_ref[...]          # (H, H) shared band matrix — no (P,H,H) broadcast
    bw = bw_ref[...]          # (W, W)

    def body(pi, carry):
        xp = x_ref[pi].astype(op_dtype)                              # (H, W)
        t = jnp.dot(bh, xp, preferred_element_type=jnp.float32)      # row pass
        out = jnp.dot(t.astype(op_dtype), bw,
                      preferred_element_type=jnp.float32)            # col pass
        o_ref[pi] = out.astype(o_ref.dtype)
        return carry

    lax.fori_loop(0, p, body, 0, unroll=unroll)


# ----------------------------------------------------------------------------
# wrapper (matches Box(r).forward(x) for NCHW input)
# ----------------------------------------------------------------------------
def box_filter(x, r):
    assert x.ndim == 4
    n, c, h, w = x.shape
    assert 2 * r + 1 <= h and 2 * r + 1 <= w, "box window larger than plane"

    if not jnp.issubdtype(x.dtype, jnp.floating):
        x = x.astype(jnp.float32)
    io_dtype = x.dtype
    io_item = jnp.dtype(io_dtype).itemsize
    # MXU operand dtype: bf16 only when the input is already bf16 (the 0/1 band
    # matrices are exact in bf16; f32 inputs are not re-rounded).
    op_dtype = jnp.bfloat16 if io_dtype == jnp.bfloat16 else jnp.float32
    op_item = jnp.dtype(op_dtype).itemsize

    nc = n * c
    hp = _round_up(h, 8)       # sublane-dense
    wp = _round_up(w, 128)     # lane-dense stores (unmasked vst)

    # ---- generation-aware VMEM budget -> planes per grid step --------------
    try:
        vmem_cap = int(pltpu.get_tpu_info().vmem_capacity_bytes)
    except Exception:                      # query unavailable -> be conservative
        vmem_cap = 64 << 20                # v7x physical VMEM
    vmem_limit = int(min(vmem_cap // 2, 64 << 20))
    block_budget = (vmem_limit * 3) // 5   # headroom for pipeline/compiler scratch

    plane_io_bytes = hp * wp * 4 * io_item                 # 2x in + 2x out buffers
    const_bytes = 2 * (hp * hp + wp * wp) * op_item        # B_H/B_W, double-buffered
    temp_bytes = hp * wp * (2 * op_item + 8)               # per-plane loop temporaries
    avail = max(block_budget - const_bytes - temp_bytes, plane_io_bytes)
    p = int(max(1, min(nc, avail // plane_io_bytes)))
    if nc > 1:
        p = min(p, int(pl.cdiv(nc, 2)))    # keep >= 2 grid steps: feed both v7x cores
    p = min(p, 256)                        # bound trace size of the per-plane loop
    g = int(pl.cdiv(nc, p))
    nc_pad = g * p

    xf = x.reshape(nc, h, w)               # metadata-only reshape, native dtype
    if (nc_pad, hp, wp) != (nc, h, w):
        # zero padding contributes nothing to the clipped window sums
        xf = jnp.pad(xf, ((0, nc_pad - nc), (0, hp - h), (0, wp - w)))

    bh = _band_matrix(hp, r, op_dtype)
    bw = _band_matrix(wp, r, op_dtype)

    flops = 2 * nc_pad * hp * wp * (hp + wp)
    bytes_accessed = nc_pad * hp * wp * 2 * io_item + (hp * hp + wp * wp) * op_item

    kernel = functools.partial(_box_kernel, unroll=True if p <= 32 else 8)

    out = pl.pallas_call(
        kernel,
        out_shape=jax.ShapeDtypeStruct((nc_pad, hp, wp), io_dtype),
        grid=(g,),
        in_specs=[
            pl.BlockSpec((hp, hp), lambda i: (0, 0)),        # B_H (constant)
            pl.BlockSpec((wp, wp), lambda i: (0, 0)),        # B_W (constant)
            pl.BlockSpec((p, hp, wp), lambda i: (i, 0, 0)),  # x planes
        ],
        out_specs=pl.BlockSpec((p, hp, wp), lambda i: (i, 0, 0)),
        compiler_params=pltpu.CompilerParams(
            dimension_semantics=("parallel",),
            vmem_limit_bytes=vmem_limit),
        cost_estimate=pl.CostEstimate(
            flops=flops, transcendentals=0, bytes_accessed=bytes_accessed),
    )(bh, bw, xf)

    if (nc_pad, hp, wp) != (nc, h, w):
        out = out[:nc, :h, :w]
    return out.reshape(n, c, h, w)


# ----------------------------------------------------------------------------
# host float64 reference (mirrors the PyTorch diff_x / diff_y / cumsum exactly)
# ----------------------------------------------------------------------------
def _np_diff_x(v, r):
    left = v[:, :, r:2 * r + 1]
    middle = v[:, :, 2 * r + 1:] - v[:, :, :-2 * r - 1]
    right = v[:, :, -1:] - v[:, :, -2 * r - 1:-r - 1]
    return np.concatenate([left, middle, right], axis=2)


def _np_diff_y(v, r):
    left = v[:, :, :, r:2 * r + 1]
    middle = v[:, :, :, 2 * r + 1:] - v[:, :, :, :-2 * r - 1]
    right = v[:, :, :, -1:] - v[:, :, :, -2 * r - 1:-r - 1]
    return np.concatenate([left, middle, right], axis=3)


def _np_box_reference(x, r):
    return _np_diff_y(_np_diff_x(np.cumsum(x, axis=2), r).cumsum(axis=3), r)


if __name__ == "__main__":
    key = jax.random.PRNGKey(0)
    n, c, h, w, r = 2, 4, 16, 16, 2
    x = jax.random.normal(key, (n, c, h, w), dtype=jnp.float32)

    out = jax.block_until_ready(box_filter(x, r))

    ref = _np_box_reference(np.asarray(x, dtype=np.float64), r)
    np.testing.assert_allclose(np.asarray(out), ref.astype(np.float32),
                               rtol=1e-2, atol=1e-2)
    print("KERNEL_OK")
</pallas_src>

<mosaic_0001>
module attributes {stable_mosaic.version = 11 : i64} {
  func.func @_box_kernel(%arg0: i32, %arg1: memref<16x16xf32, #tpu.memory_space<vmem>>, %arg2: memref<128x128xf32, #tpu.memory_space<vmem>>, %arg3: memref<4x16x128xf32, #tpu.memory_space<vmem>>, %arg4: memref<4x16x128xf32, #tpu.memory_space<vmem>>) attributes {dimension_semantics = [#tpu.dimension_semantics<parallel>], iteration_bounds = array<i64: 2>, scalar_prefetch = 0 : i64, scratch_operands = 0 : i64, tpu.core_type = #tpu.core_type<tc>, window_params = [{pipeline_mode = #tpu.pipeline_mode<synchronous>, transform_indices = @transform_0, window_bounds = array<i64: 16, 16>}, {pipeline_mode = #tpu.pipeline_mode<synchronous>, transform_indices = @transform_1, window_bounds = array<i64: 128, 128>}, {transform_indices = @transform_2, window_bounds = array<i64: 4, 16, 128>}, {transform_indices = @transform_3, window_bounds = array<i64: 4, 16, 128>}]} {
    %c0 = arith.constant 0 : index
    %c0_0 = arith.constant 0 : index
    %0 = vector.load %arg1[%c0, %c0_0] : memref<16x16xf32, #tpu.memory_space<vmem>>, vector<16x16xf32>
    %c0_1 = arith.constant 0 : index
    %c0_2 = arith.constant 0 : index
    %1 = vector.load %arg2[%c0_1, %c0_2] : memref<128x128xf32, #tpu.memory_space<vmem>>, vector<128x128xf32>
    %c0_i32 = arith.constant 0 : i32
    %2 = arith.index_cast %c0_i32 : i32 to index
    %c0_3 = arith.constant 0 : index
    %c0_4 = arith.constant 0 : index
    %3 = vector.load %arg3[%2, %c0_3, %c0_4] : memref<4x16x128xf32, #tpu.memory_space<vmem>>, vector<1x16x128xf32>
    %4 = vector.shape_cast %3 : vector<1x16x128xf32> to vector<16x128xf32>
    %cst = arith.constant dense<0.000000e+00> : vector<16x128xf32>
    %5 = tpu.matmul %0, %4, %cst {dimension_numbers = #tpu.dot_dimension_numbers<[1], [0], [0], [1], [0, 0, 1, 1], [], []>} : vector<16x16xf32>, vector<16x128xf32>, vector<16x128xf32> -> vector<16x128xf32>
    %cst_5 = arith.constant dense<0.000000e+00> : vector<16x128xf32>
    %6 = tpu.matmul %5, %1, %cst_5 {dimension_numbers = #tpu.dot_dimension_numbers<[1], [0], [0], [1], [0, 0, 1, 1], [], []>} : vector<16x128xf32>, vector<128x128xf32>, vector<16x128xf32> -> vector<16x128xf32>
    %7 = arith.index_cast %c0_i32 : i32 to index
    %c0_6 = arith.constant 0 : index
    %c0_7 = arith.constant 0 : index
    %8 = vector.load %arg4[%7, %c0_6, %c0_7] : memref<4x16x128xf32, #tpu.memory_space<vmem>>, vector<1x16x128xf32>
    %9 = vector.shape_cast %8 : vector<1x16x128xf32> to vector<16x128xf32>
    %10 = vector.shape_cast %6 : vector<16x128xf32> to vector<1x16x128xf32>
    tpu.vector_store %arg4[%7, %c0_6, %c0_7], %10 {strides = array<i32>} : memref<4x16x128xf32, #tpu.memory_space<vmem>>, vector<1x16x128xf32>,
    %c1_i32 = arith.constant 1 : i32
    %11 = arith.index_cast %c1_i32 : i32 to index
    %c0_8 = arith.constant 0 : index
    %c0_9 = arith.constant 0 : index
    %12 = vector.load %arg3[%11, %c0_8, %c0_9] : memref<4x16x128xf32, #tpu.memory_space<vmem>>, vector<1x16x128xf32>
    %13 = vector.shape_cast %12 : vector<1x16x128xf32> to vector<16x128xf32>
    %cst_10 = arith.constant dense<0.000000e+00> : vector<16x128xf32>
    %14 = tpu.matmul %0, %13, %cst_10 {dimension_numbers = #tpu.dot_dimension_numbers<[1], [0], [0], [1], [0, 0, 1, 1], [], []>} : vector<16x16xf32>, vector<16x128xf32>, vector<16x128xf32> -> vector<16x128xf32>
    %cst_11 = arith.constant dense<0.000000e+00> : vector<16x128xf32>
    %15 = tpu.matmul %14, %1, %cst_11 {dimension_numbers = #tpu.dot_dimension_numbers<[1], [0], [0], [1], [0, 0, 1, 1], [], []>} : vector<16x128xf32>, vector<128x128xf32>, vector<16x128xf32> -> vector<16x128xf32>
    %16 = arith.index_cast %c1_i32 : i32 to index
    %c0_12 = arith.constant 0 : index
    %c0_13 = arith.constant 0 : index
    %17 = vector.load %arg4[%16, %c0_12, %c0_13] : memref<4x16x128xf32, #tpu.memory_space<vmem>>, vector<1x16x128xf32>
    %18 = vector.shape_cast %17 : vector<1x16x128xf32> to vector<16x128xf32>
    %19 = vector.shape_cast %15 : vector<16x128xf32> to vector<1x16x128xf32>
    tpu.vector_store %arg4[%16, %c0_12, %c0_13], %19 {strides = array<i32>} : memref<4x16x128xf32, #tpu.memory_space<vmem>>, vector<1x16x128xf32>,
    %c2_i32 = arith.constant 2 : i32
    %20 = arith.index_cast %c2_i32 : i32 to index
    %c0_14 = arith.constant 0 : index
    %c0_15 = arith.constant 0 : index
    %21 = vector.load %arg3[%20, %c0_14, %c0_15] : memref<4x16x128xf32, #tpu.memory_space<vmem>>, vector<1x16x128xf32>
    %22 = vector.shape_cast %21 : vector<1x16x128xf32> to vector<16x128xf32>
    %cst_16 = arith.constant dense<0.000000e+00> : vector<16x128xf32>
    %23 = tpu.matmul %0, %22, %cst_16 {dimension_numbers = #tpu.dot_dimension_numbers<[1], [0], [0], [1], [0, 0, 1, 1], [], []>} : vector<16x16xf32>, vector<16x128xf32>, vector<16x128xf32> -> vector<16x128xf32>
    %cst_17 = arith.constant dense<0.000000e+00> : vector<16x128xf32>
    %24 = tpu.matmul %23, %1, %cst_17 {dimension_numbers = #tpu.dot_dimension_numbers<[1], [0], [0], [1], [0, 0, 1, 1], [], []>} : vector<16x128xf32>, vector<128x128xf32>, vector<16x128xf32> -> vector<16x128xf32>
    %25 = arith.index_cast %c2_i32 : i32 to index
    %c0_18 = arith.constant 0 : index
    %c0_19 = arith.constant 0 : index
    %26 = vector.load %arg4[%25, %c0_18, %c0_19] : memref<4x16x128xf32, #tpu.memory_space<vmem>>, vector<1x16x128xf32>
    %27 = vector.shape_cast %26 : vector<1x16x128xf32> to vector<16x128xf32>
    %28 = vector.shape_cast %24 : vector<16x128xf32> to vector<1x16x128xf32>
    tpu.vector_store %arg4[%25, %c0_18, %c0_19], %28 {strides = array<i32>} : memref<4x16x128xf32, #tpu.memory_space<vmem>>, vector<1x16x128xf32>,
    %c3_i32 = arith.constant 3 : i32
    %29 = arith.index_cast %c3_i32 : i32 to index
    %c0_20 = arith.constant 0 : index
    %c0_21 = arith.constant 0 : index
    %30 = vector.load %arg3[%29, %c0_20, %c0_21] : memref<4x16x128xf32, #tpu.memory_space<vmem>>, vector<1x16x128xf32>
    %31 = vector.shape_cast %30 : vector<1x16x128xf32> to vector<16x128xf32>
    %cst_22 = arith.constant dense<0.000000e+00> : vector<16x128xf32>
    %32 = tpu.matmul %0, %31, %cst_22 {dimension_numbers = #tpu.dot_dimension_numbers<[1], [0], [0], [1], [0, 0, 1, 1], [], []>} : vector<16x16xf32>, vector<16x128xf32>, vector<16x128xf32> -> vector<16x128xf32>
    %cst_23 = arith.constant dense<0.000000e+00> : vector<16x128xf32>
    %33 = tpu.matmul %32, %1, %cst_23 {dimension_numbers = #tpu.dot_dimension_numbers<[1], [0], [0], [1], [0, 0, 1, 1], [], []>} : vector<16x128xf32>, vector<128x128xf32>, vector<16x128xf32> -> vector<16x128xf32>
    %34 = arith.index_cast %c3_i32 : i32 to index
    %c0_24 = arith.constant 0 : index
    %c0_25 = arith.constant 0 : index
    %35 = vector.load %arg4[%34, %c0_24, %c0_25] : memref<4x16x128xf32, #tpu.memory_space<vmem>>, vector<1x16x128xf32>
    %36 = vector.shape_cast %35 : vector<1x16x128xf32> to vector<16x128xf32>
    %37 = vector.shape_cast %33 : vector<16x128xf32> to vector<1x16x128xf32>
    tpu.vector_store %arg4[%34, %c0_24, %c0_25], %37 {strides = array<i32>} : memref<4x16x128xf32, #tpu.memory_space<vmem>>, vector<1x16x128xf32>,
    %c4_i32 = arith.constant 4 : i32
    return
  }
  func.func @transform_0(%arg0: i32) -> (i32, i32) {
    %c0_i32 = arith.constant 0 : i32
    %c0_i32_0 = arith.constant 0 : i32
    %c0_i32_1 = arith.constant 0 : i32
    return %c0_i32, %c0_i32_0 : i32, i32
  }
  func.func @transform_1(%arg0: i32) -> (i32, i32) {
    %c0_i32 = arith.constant 0 : i32
    %c0_i32_0 = arith.constant 0 : i32
    %c0_i32_1 = arith.constant 0 : i32
    return %c0_i32, %c0_i32_0 : i32, i32
  }
  func.func @transform_2(%arg0: i32) -> (i32, i32, i32) {
    %c0_i32 = arith.constant 0 : i32
    %c0_i32_0 = arith.constant 0 : i32
    %c0_i32_1 = arith.constant 0 : i32
    return %arg0, %c0_i32, %c0_i32_0 : i32, i32, i32
  }
  func.func @transform_3(%arg0: i32) -> (i32, i32, i32) {
    %c0_i32 = arith.constant 0 : i32
    %c0_i32_0 = arith.constant 0 : i32
    %c0_i32_1 = arith.constant 0 : i32
    return %arg0, %c0_i32, %c0_i32_0 : i32, i32, i32
  }
}

</mosaic_0001>

<bundles_post_ra>
// kernel: tpu_custom_call.1
= control target key start
LH: loop header
LB: loop body
LE: loop exit
PB: predicated region body
PF: predicated region fallthrough
CT: control target
= control target key end

     0   :  { %8 = vsyncpa [#allocation3], 0  ;;  %s1929_s0 = inlined_call_operand.hbm [shape: f32[16,16], index: 0, kind: input, shape index: {}]   ;;  %s1930_s1 = inlined_call_operand.hbm [shape: f32[128,128], index: 1, kind: input, shape index: {}]   ;;  %s1931_s2 = inlined_call_operand.hbm [shape: f32[8,16,128], index: 2, kind: input, shape index: {}]   ;;  %s1932_s3 = inlined_call_operand.hbm [shape: f32[8,16,128], index: 3, kind: output, shape index: {}]  }
   0x1   :  { %9 = vsyncpa [#allocation6], 0 }
   0x2   :  { %10 = vsyncpa [#allocation4], 0 }
   0x3   :  { %12 = vsyncpa [#allocation4 + $0x1], 0  ;;  %s1526_s12 = smov 0   ;;  %s1528_s13 = smov 0  }
   0x4   :  { %s1530_s14 = smov 0   ;;  %s1532_s15 = smov 0  }
   0x5 LB: > { %s1547_s16 = sadd.s32 4294967295, %s1496_s15   ;;  %s973_s17 = sadd.s32 4294967294, %s1496_s15   ;;  %s1496_s15 = sphi %s1532_s15, %s1956_s15   ;;  %s1492_s14 = sphi %s1530_s14, %s1955_s14   ;;  %s1488_s13 = sphi %s1528_s13, %s1954_s13   ;;  %s1484_s12 = sphi %s1526_s12, %s1953_s12  }
   0x6   : > { %s1551_s18 = sadd.s32 1, %s1496_s15   ;;  %s67_s19 = sadd.s32 1, %s1492_s14 }
   0x7   : > { %s64_s20 = ssub.s32 %s1496_s15, %s1551_s18  ;;  %p74_p0 = scmp.ne.s32.totalorder %s1492_s14, %s1488_s13 }
   0x8   : > { %p65_p1 = scmp.eq.s32.totalorder %s64_s20, 0  ;;  %p75_p2 = scmp.eq.s32.totalorder %s1496_s15, 0 }
   0x9   : > { %p80_p3 = scmp.ne.s32.totalorder %s1488_s13, %s1484_s12  ;;  %p1934_p4 = scmp.eq.s32.totalorder %s1547_s16, 0 }
   0xa   : > { %s1563_s21 = scalar_select %p65_p1, %s1492_s14, %s67_s19  }
   0xb   : > { %p1565_p5 = por %p75_p2, %p74_p0  ;;  %p1571_p6 = por %p1934_p4, %p80_p3 }
   0xc   : > { %p104_p7 = scmp.eq.s32.totalorder %s1547_s16, 1  ;;  %p110_p8 = scmp.eq.s32.totalorder %s973_s17, 1 }
   0xd   : > { %s1938_s23 = scalar_select %p1571_p6, 1, 0 }
   0xe   : > { %p974_p9 = scmp.ge.s32.totalorder %s1496_s15, 1  ;;  %p117_p10 = scmp.lt.s32.totalorder %s1496_s15, 3 }
   0xf   : > { %p1578_p11 = por %p104_p7, %p74_p0  ;;  %p1582_p12 = por %p110_p8, %p80_p3 }
  0x10   : > { %p1586_p13 = pnand %p974_p9, %p117_p10  ;;  %s1498_s27 = smov [#allocation2]  }
  0x11   : > { %s1939_s24 = scalar_select %p1578_p11, 1, 0 }
  0x12   : > { %s1940_s25 = scalar_select %p1582_p12, 1, 0 }
  0x13   : > { %s1941_s26 = scalar_select %p1586_p13, 1, 0 }
  0x14   : > { %p1285_p1 = pneg %p1586_p13  ;;  %s129_s28 = sshll.u32 %s1498_s27, 4  ;;  %s130_s28 = int_to_ptr.vmem [resolvable:$true] %s129_s28 }
  0x15   : > { %p1302_p3 = scmp.lt.s32.totalorder %s1496_s15, 2  ;;  %s1499_s30 = smov [#allocation5]  }
  0x16   : > { %p1594_p2 = pnand %p1285_p1, %p1934_p4  ;;  %s142_s4 = sshll.u32 %s1499_s30, 4  ;;  %s143_s4 = int_to_ptr.vmem [resolvable:$true] %s142_s4 }
  0x17   : > { %s1355_s5 = scalar_lea.vmem %s130_s28, 256  ;;  %p1363_p12 = scmp.lt.s32.totalorder %s130_s28, %s130_s28 }
  0x18   : > { %p1346_p7 = pneg %p1594_p2  ;;  %p1356_p8 = scmp.ne.s32.totalorder %s130_s28, %s1355_s5 }
  0x19   : > { %p1364_p11 = scmp.lt.s32.totalorder %s1355_s5, %s1355_s5 }
  0x1a   : > { %p1358_p9 = pnand %p1356_p8, %p1346_p7 }
  0x1b   : > { %p1365_p1 = por %p1364_p11, %p1363_p12 }
  0x1c   : > { %p1359_p10 = pneg %p1358_p9 }
  0x1e   : > { %p1366_p4 = pnand %p1365_p1, %p1359_p10 }
  0x20   : > { %1369 = shalt.err (!%p1366_p4)
}
  0x21   : > { %s1500_s6 = smov 128   ;;  %s1501_s7 = smov 8  }
  0x22   : > { %1288 = dma.hbm_to_vmem [thread:$0]  (!%p1594_p2), %s1929_s0, 256, %s130_s28, [#allocation3], %s1500_s6, %s1500_s6, %s1501_s7  }
  0x23   : > { %p1617_p8 = pnand %p1302_p3, %p1565_p5  ;;  %s1381_s11 = scalar_lea.vmem %s143_s4, 2048 }
  0x24   : > { %p1382_p4 = scmp.ne.s32.totalorder %s143_s4, %s1381_s11  ;;  %p1389_p9 = scmp.lt.s32.totalorder %s143_s4, %s143_s4 }
  0x25   : > { %p1390_p10 = scmp.lt.s32.totalorder %s1381_s11, %s1381_s11 }
  0x26   : > { %p1384_p11 = pnand %p1382_p4, %p1346_p7 }
  0x27   : > { %p1391_p1 = por %p1390_p10, %p1389_p9 }
  0x28   : > { %p1385_p12 = pneg %p1384_p11 }
  0x2a   : > { %p1392_p0 = pnand %p1391_p1, %p1385_p12 }
  0x2c   : > { %1395 = shalt.err (!%p1392_p0)
}
  0x2d   : > { %1291 = dma.hbm_to_vmem [thread:$0]  (!%p1594_p2), %s1930_s1, 2048, %s143_s4, [#allocation6], %s1500_s6, %s1500_s6, %s1501_s7  }
  0x2e   : > { %s156_s20 = sand.u32 1, %s1496_s15   ;;  %s158_s22 = sand.u32 1, %s1492_s14  }
  0x2f   : > { %s978_s27 = sshll.u32 %s158_s22, 6  ;;  %s1014_s28 = sshll.u32 %s1496_s15, 10 }
  0x30   : > { %s1638_s8 = scalar_lea.hbm %s1931_s2, %s1014_s28  ;;  %s160_s29 = scalar_lea.vmem [#allocation7], %s978_s27 }
  0x31   : > { %s168_s9 = sshll.u32 %s160_s29, 4  ;;  %s1642_s11 = scalar_lea.sflag [#allocation3], %s156_s20  ;;  %s1640_s9 = int_to_ptr.vmem [resolvable:$true] %s168_s9 }
  0x32   : > { %s1396_s17 = scalar_lea.hbm %s1638_s8, 1024  ;;  %p1398_p2 = pneg %p1617_p8 }
  0x33   : > { %p1397_p5 = scmp.ne.s32.totalorder %s1638_s8, %s1396_s17  ;;  %s1401_s22 = scalar_lea.hbm %s1931_s2, 2048 }
  0x34   : > { %p1402_p7 = scmp.lt.s32.totalorder %s1638_s8, %s1931_s2  ;;  %p1403_p4 = scmp.lt.s32.totalorder %s1401_s22, %s1396_s17 }
  0x35   : > { %p1399_p0 = pnand %p1398_p2, %p1397_p5 }
  0x36   : > { %p1404_p11 = por %p1403_p4, %p1402_p7 }
  0x37   : > { %p1400_p3 = pneg %p1399_p0 }
  0x39   : > { %p1405_p12 = pnand %p1404_p11, %p1400_p3 }
  0x3b   : > { %1408 = shalt.err (!%p1405_p12)
}
  0x3c   : > { %s1409_s20 = scalar_lea.vmem %s1640_s9, 1024  ;;  %s1502_s27 = smov [#allocation7]  }
  0x3d   : > { %p1410_p9 = scmp.ne.s32.totalorder %s1640_s9, %s1409_s20  ;;  %s1414_s5 = sshll.u32 %s1502_s27, 4  ;;  %s1415_s5 = int_to_ptr.vmem [resolvable:$false] %s1414_s5 }
  0x3e   : > { %s1416_s29 = scalar_lea.vmem %s1415_s5, 2048  ;;  %p1417_p5 = scmp.lt.s32.totalorder %s1640_s9, %s1415_s5 }
  0x3f   : > { %p1412_p10 = pnand %p1410_p9, %p1398_p2  ;;  %p1418_p0 = scmp.lt.s32.totalorder %s1416_s29, %s1409_s20 }
  0x41   : > { %p1413_p1 = pneg %p1412_p10  ;;  %p1419_p6 = por %p1418_p0, %p1417_p5 }
  0x43   : > { %p1420_p13 = pnand %p1419_p6, %p1413_p1 }
  0x45   : > { %1423 = shalt.err (!%p1420_p13)
}
  0x46   : > { %1295 = dma.hbm_to_vmem [thread:$0]  (!%p1617_p8), %s1638_s8, 1024, %s1640_s9, %s1642_s11, %s1500_s6, %s1500_s6, %s1501_s7  }
  0x47   : > { %p1944_p2 = scmp.ne.s32.totalorder %s1941_s26, 0 }
  0x48   : > { %p1945_p3 = scmp.eq.s32.totalorder (!%p1944_p2), %s1547_s16, 0 }
  0x49   : > { %180 = sbr.rel (%p1944_p2) target bundleno = 699 (0x2bb), region = 32 }
  0x4e   : > { %1467 = dma.done.wait (%p1945_p3), [#allocation3], 256   ;;  %p1946_p7 = pmov %p1945_p3 }
  0x4f   : > { %p1947_p6 = pmov %p1945_p3 }
  0x50   : > { %1469 = vsyncadd (%p1946_p7), [#allocation3], 4294967040 }
  0x51   : > { %1471 = dma.done.wait (%p1947_p6), [#allocation6], 2048   ;;  %p1948_p13 = pmov %p1945_p3 }
  0x52   : > { %s190_s6 = sand.u32 1, %s1547_s16   ;;  %s192_s7 = sand.u32 1, %s1488_s13  }
  0x53   : > { %1473 = vsyncadd (%p1948_p13), [#allocation6], 4294965248  ;;  %s1680_s26 = sshll.u32 %s192_s7, 6  ;;  %s191_s10 = scalar_lea.sflag [#allocation3], %s190_s6 }
  0x54   : > { %s1683_s8 = scalar_lea.vmem [#allocation7], %s1680_s26  ;;  %p1949_p8 = scmp.ne.s32.totalorder %s1938_s23, 0 }
  0x56   : > { %1475 = dma.done.wait (%p1949_p8), %s191_s10, 1024  }
  0x57   : > { %1477 = vsyncadd (%p1949_p8), %s191_s10, 4294966272  ;;  %v238_v0 = vld [vmem:[%s1683_s8 + $0x8] sm:$0xff]  ;;  %v990_v1 = vld [vmem:[%s1683_s8 + $0x18] sm:$0xff]  ;;  %vm239_vm0 = vcmask 130048   ;;  %s216_s23 = scalar_lea.vmem [#allocation8], %s1680_s26  ;;  %s1016_s11 = sshll.u32 %s1547_s16, 10 }
  0x58   : > { %v237_v2 = vld [vmem:[%s1683_s8] sm:$0xff]  ;;  %1105 = vmatprep.subr.mxu1 %v238_v0  ;;  %1147 = vmatprep.subr.mxu0 %v990_v1  ;;  %v989_v3 = vld [vmem:[%s1683_s8 + $0x10] sm:$0xff]  ;;  %v1695_v5 = vld [vmem:[#allocation2 + $0x8] sm:$0xff]  ;;  %s881_s9 = sshll.u32 %s216_s23, 4  ;;  %s1884_s19 = scalar_lea.hbm %s1932_s3, %s1016_s11  ;;  %s1879_s9 = int_to_ptr.vmem [resolvable:$true] %s881_s9 }
  0x59   : > { %v1693_v4 = vld [vmem:[#allocation2] sm:$0xff]  ;;  %1106 = vmatpush3.msra.mxu1 %v238_v0  ;;  %1148 = vmatpush3.msra.mxu0 %v990_v1  ;;  %v1699_v6 = vld [vmem:[#allocation5 + $0x78] sm:$0xff]  ;;  %v1713_v8 = vld [vmem:[#allocation5 + $0x68] sm:$0xff]  ;;  %s1888_s16 = scalar_lea.sflag [#allocation4], %s192_s7  ;;  %s1424_s22 = scalar_lea.vmem %s1879_s9, 1024 }
  0x5a   : > { %1107 = vmatprep.subr.mxu1 %v237_v2  ;;  %1149 = vmatprep.subr.mxu0 %v989_v3  ;;  %v1707_v7 = vld [vmem:[#allocation5 + $0x70] sm:$0xff]  ;;  %v1719_v9 = vld [vmem:[#allocation5 + $0x60] sm:$0xff]  ;;  %v1725_v10 = vld [vmem:[#allocation5 + $0x58] sm:$0xff]  ;;  %p1425_p4 = scmp.ne.s32.totalorder %s1879_s9, %s1424_s22  ;;  %p1950_p11 = scmp.ne.s32.totalorder %s1939_s24, 0 }
  0x5b   : > { %1108 = vmatpush3.msra.mxu1 %v237_v2  ;;  %1109 = vmatprep.mubr.msk.f32.mxu1 %vm239_vm0, %v1693_v4  ;;  %v1731_v11 = vld [vmem:[#allocation5 + $0x50] sm:$0xff]  ;;  %v1737_v12 = vld [vmem:[#allocation5 + $0x48] sm:$0xff]  ;;  %v1743_v13 = vld [vmem:[#allocation5 + $0x40] sm:$0xff]  ;;  %s1503_s28 = smov [#allocation8]  }
  0x5c   : > { %1150 = vmatpush3.msra.mxu0 %v989_v3  ;;  %1151 = vmatprep.mubr.msk.f32.mxu0 %vm239_vm0, %v1693_v4  ;;  %v1749_v14 = vld [vmem:[#allocation5 + $0x38] sm:$0xff]  ;;  %v1755_v15 = vld [vmem:[#allocation5 + $0x30] sm:$0xff]  ;;  %v1761_v16 = vld [vmem:[#allocation5 + $0x28] sm:$0xff]  ;;  %p1426_p12 = pnand %p1425_p4, %p1950_p11  ;;  %s1428_s30 = sshll.u32 %s1503_s28, 4  ;;  %s1429_s30 = int_to_ptr.vmem [resolvable:$false] %s1428_s30 }
  0x5d   : > { %1110 = vmatmul.mubr.msk.f32.vlgmr.msra.gmra.mxu1 %vm239_vm0, %v1695_v5  ;;  %1152 = vmatmul.mubr.msk.f32.vlgmr.msra.gmra.mxu0 %vm239_vm0, %v1695_v5  ;;  %v1767_v17 = vld [vmem:[#allocation5 + $0x20] sm:$0xff]  ;;  %v1773_v18 = vld [vmem:[#allocation5 + $0x18] sm:$0xff]  ;;  %v1779_v19 = vld [vmem:[#allocation5 + $0x10] sm:$0xff]  ;;  %s1430_s20 = scalar_lea.vmem %s1429_s30, 2048  ;;  %p1431_p10 = scmp.lt.s32.totalorder %s1879_s9, %s1429_s30 }
  0x5e   : > { %1112 = vmatprep.subr.mxu1 %v1699_v6  ;;  %1154 = vmatprep.subr.mxu0 %v1699_v6  ;;  %v1785_v20 = vld [vmem:[#allocation5 + $0x8] sm:$0xff]  ;;  %v1795_v21 = vld [vmem:[#allocation5] sm:$0xff]  ;;  %v1002_v23 = vld [vmem:[%s1683_s8 + $0x38] sm:$0xff]  ;;  %p1427_p9 = pneg %p1426_p12  ;;  %p1432_p1 = scmp.lt.s32.totalorder %s1430_s20, %s1424_s22 }
  0x5f   : > { %1113 = vmatpush3.msra.mxu1 %v1699_v6  ;;  %1155 = vmatpush3.msra.mxu0 %v1699_v6  ;;  %v996_v22 = vld [vmem:[%s1683_s8 + $0x28] sm:$0xff]  ;;  %v995_v28 = vld [vmem:[%s1683_s8 + $0x20] sm:$0xff]  ;;  %v1001_v29 = vld [vmem:[%s1683_s8 + $0x30] sm:$0xff] }
  0x60   : > { %1114 = vmatprep.subr.mxu1 %v1707_v7  ;;  %1156 = vmatprep.subr.mxu0 %v1707_v7  ;;  %p1433_p5 = por %p1432_p1, %p1431_p10 }
  0x61   : > { %1115 = vmatpush3.msra.mxu1 %v1707_v7  ;;  %1157 = vmatpush3.msra.mxu0 %v1707_v7 }
  0x62   : > { %1116 = vmatprep.subr.mxu1 %v1713_v8  ;;  %1158 = vmatprep.subr.mxu0 %v1713_v8  ;;  %p1434_p0 = pnand %p1433_p5, %p1427_p9 }
  0x63   : > { %1117 = vmatpush3.msra.mxu1 %v1713_v8  ;;  %1159 = vmatpush3.msra.mxu0 %v1713_v8 }
  0x64   : > { %1118 = vmatprep.subr.mxu1 %v1719_v9  ;;  %1160 = vmatprep.subr.mxu0 %v1719_v9 }
  0x65   : > { %1119 = vmatpush3.msra.mxu1 %v1719_v9  ;;  %1161 = vmatpush3.msra.mxu0 %v1719_v9 }
  0x66   : > { %1120 = vmatprep.subr.mxu1 %v1725_v10  ;;  %1162 = vmatprep.subr.mxu0 %v1725_v10 }
  0x67   : > { %1121 = vmatpush3.msra.mxu1 %v1725_v10  ;;  %1163 = vmatpush3.msra.mxu0 %v1725_v10 }
  0x68   : > { %1122 = vmatprep.subr.mxu1 %v1731_v11  ;;  %1164 = vmatprep.subr.mxu0 %v1731_v11 }
  0x69   : > { %1123 = vmatpush3.msra.mxu1 %v1731_v11  ;;  %1165 = vmatpush3.msra.mxu0 %v1731_v11 }
  0x6a   : > { %1124 = vmatprep.subr.mxu1 %v1737_v12  ;;  %1166 = vmatprep.subr.mxu0 %v1737_v12 }
  0x6b   : > { %1125 = vmatpush3.msra.mxu1 %v1737_v12  ;;  %1167 = vmatpush3.msra.mxu0 %v1737_v12 }
  0x6c   : > { %1126 = vmatprep.subr.mxu1 %v1743_v13  ;;  %1168 = vmatprep.subr.mxu0 %v1743_v13 }
  0x6d   : > { %1127 = vmatpush3.msra.mxu1 %v1743_v13  ;;  %1169 = vmatpush3.msra.mxu0 %v1743_v13 }
  0x6e   : > { %1128 = vmatprep.subr.mxu1 %v1749_v14  ;;  %1170 = vmatprep.subr.mxu0 %v1749_v14 }
  0x6f   : > { %1129 = vmatpush3.msra.mxu1 %v1749_v14  ;;  %1171 = vmatpush3.msra.mxu0 %v1749_v14 }
  0x70   : > { %1130 = vmatprep.subr.mxu1 %v1755_v15  ;;  %1172 = vmatprep.subr.mxu0 %v1755_v15 }
  0x71   : > { %1131 = vmatpush3.msra.mxu1 %v1755_v15  ;;  %1173 = vmatpush3.msra.mxu0 %v1755_v15 }
  0x72   : > { %1132 = vmatprep.subr.mxu1 %v1761_v16  ;;  %1174 = vmatprep.subr.mxu0 %v1761_v16 }
  0x73   : > { %1133 = vmatpush3.msra.mxu1 %v1761_v16  ;;  %1175 = vmatpush3.msra.mxu0 %v1761_v16 }
  0x74   : > { %1134 = vmatprep.subr.mxu1 %v1767_v17  ;;  %1176 = vmatprep.subr.mxu0 %v1767_v17 }
  0x75   : > { %1135 = vmatpush3.msra.mxu1 %v1767_v17  ;;  %1177 = vmatpush3.msra.mxu0 %v1767_v17 }
  0x76   : > { %1136 = vmatprep.subr.mxu1 %v1773_v18  ;;  %1178 = vmatprep.subr.mxu0 %v1773_v18 }
  0x77   : > { %1137 = vmatpush3.msra.mxu1 %v1773_v18  ;;  %1179 = vmatpush3.msra.mxu0 %v1773_v18 }
  0x78   : > { %1138 = vmatprep.subr.mxu1 %v1779_v19  ;;  %1180 = vmatprep.subr.mxu0 %v1779_v19 }
  0x79   : > { %1139 = vmatpush3.msra.mxu1 %v1779_v19  ;;  %1181 = vmatpush3.msra.mxu0 %v1779_v19 }
  0x7a   : > { %1140 = vmatprep.subr.mxu1 %v1785_v20  ;;  %1182 = vmatprep.subr.mxu0 %v1785_v20 }
  0x7b   : > { %1141 = vmatpush3.msra.mxu1 %v1785_v20  ;;  %1183 = vmatpush3.msra.mxu0 %v1785_v20 }
  0x7c   : > { %1142 = vmatprep.subr.mxu1 %v1795_v21  ;;  %1184 = vmatprep.subr.mxu0 %v1795_v21 }
  0x7d   : > { %1143 = vmatpush3.msra.mxu1 %v1795_v21  ;;  %1185 = vmatpush3.msra.mxu0 %v1795_v21 }
  0x7e   : > { %1189 = vmatprep.subr.mxu1 %v996_v22  ;;  %1231 = vmatprep.subr.mxu0 %v1002_v23 }
 0x11d   : > { %v1111_v24 = vpop.f32.mrf.mxu1  ;;  %v1153_v25 = vpop.f32.mrf.mxu0 }
 0x11f   : > { %v312_v26 = vpop.f32.mrf.mxu1  ;;  %v467_v27 = vpop.f32.mrf.mxu0 }
 0x120   : > { %1144 = vmatprep.mubr.f32.mxu1 %v312_v26  ;;  %1186 = vmatprep.mubr.f32.mxu0 %v467_v27 }
 0x121   : > { %1145 = vmatmul.mubr.f32.vlgmr.msra.gmra.mxu1 %v1111_v24  ;;  %1187 = vmatmul.mubr.f32.vlgmr.msra.gmra.mxu0 %v1153_v25 }
 0x122   : > { %1190 = vmatpush3.msra.mxu1 %v996_v22  ;;  %1232 = vmatpush3.msra.mxu0 %v1002_v23 }
 0x123   : > { %1191 = vmatprep.subr.mxu1 %v995_v28  ;;  %1233 = vmatprep.subr.mxu0 %v1001_v29 }
 0x124   : > { %1192 = vmatpush3.msra.mxu1 %v995_v28  ;;  %1234 = vmatpush3.msra.mxu0 %v1001_v29 }
 0x125   : > { %1193 = vmatprep.mubr.msk.f32.mxu1 %vm239_vm0, %v1693_v4  ;;  %1235 = vmatprep.mubr.msk.f32.mxu0 %vm239_vm0, %v1693_v4 }
 0x126   : > { %1194 = vmatmul.mubr.msk.f32.vlgmr.msra.gmra.mxu1 %vm239_vm0, %v1695_v5  ;;  %1236 = vmatmul.mubr.msk.f32.vlgmr.msra.gmra.mxu0 %vm239_vm0, %v1695_v5 }
 0x127   : > { %1196 = vmatprep.subr.mxu1 %v1699_v6  ;;  %1238 = vmatprep.subr.mxu0 %v1699_v6 }
 0x128   : > { %1197 = vmatpush3.msra.mxu1 %v1699_v6  ;;  %1239 = vmatpush3.msra.mxu0 %v1699_v6 }
 0x129   : > { %1198 = vmatprep.subr.mxu1 %v1707_v7  ;;  %1240 = vmatprep.subr.mxu0 %v1707_v7 }
 0x12a   : > { %1199 = vmatpush3.msra.mxu1 %v1707_v7  ;;  %1241 = vmatpush3.msra.mxu0 %v1707_v7 }
 0x12b   : > { %1200 = vmatprep.subr.mxu1 %v1713_v8  ;;  %1242 = vmatprep.subr.mxu0 %v1713_v8 }
 0x12c   : > { %1201 = vmatpush3.msra.mxu1 %v1713_v8  ;;  %1243 = vmatpush3.msra.mxu0 %v1713_v8 }
 0x12d   : > { %1202 = vmatprep.subr.mxu1 %v1719_v9  ;;  %1244 = vmatprep.subr.mxu0 %v1719_v9 }
 0x12e   : > { %1203 = vmatpush3.msra.mxu1 %v1719_v9  ;;  %1245 = vmatpush3.msra.mxu0 %v1719_v9 }
 0x12f   : > { %1204 = vmatprep.subr.mxu1 %v1725_v10  ;;  %1246 = vmatprep.subr.mxu0 %v1725_v10 }
 0x130   : > { %1205 = vmatpush3.msra.mxu1 %v1725_v10  ;;  %1247 = vmatpush3.msra.mxu0 %v1725_v10 }
 0x131   : > { %1206 = vmatprep.subr.mxu1 %v1731_v11  ;;  %1248 = vmatprep.subr.mxu0 %v1731_v11 }
 0x132   : > { %1207 = vmatpush3.msra.mxu1 %v1731_v11  ;;  %1249 = vmatpush3.msra.mxu0 %v1731_v11 }
 0x133   : > { %1208 = vmatprep.subr.mxu1 %v1737_v12  ;;  %1250 = vmatprep.subr.mxu0 %v1737_v12 }
 0x134   : > { %1209 = vmatpush3.msra.mxu1 %v1737_v12  ;;  %1251 = vmatpush3.msra.mxu0 %v1737_v12 }
 0x135   : > { %1210 = vmatprep.subr.mxu1 %v1743_v13  ;;  %1252 = vmatprep.subr.mxu0 %v1743_v13 }
 0x136   : > { %1211 = vmatpush3.msra.mxu1 %v1743_v13  ;;  %1253 = vmatpush3.msra.mxu0 %v1743_v13 }
 0x137   : > { %1212 = vmatprep.subr.mxu1 %v1749_v14  ;;  %1254 = vmatprep.subr.mxu0 %v1749_v14 }
 0x138   : > { %1213 = vmatpush3.msra.mxu1 %v1749_v14  ;;  %1255 = vmatpush3.msra.mxu0 %v1749_v14 }
 0x139   : > { %1214 = vmatprep.subr.mxu1 %v1755_v15  ;;  %1256 = vmatprep.subr.mxu0 %v1755_v15 }
 0x13a   : > { %1215 = vmatpush3.msra.mxu1 %v1755_v15  ;;  %1257 = vmatpush3.msra.mxu0 %v1755_v15 }
 0x13b   : > { %1216 = vmatprep.subr.mxu1 %v1761_v16  ;;  %1258 = vmatprep.subr.mxu0 %v1761_v16 }
 0x13c   : > { %1217 = vmatpush3.msra.mxu1 %v1761_v16  ;;  %1259 = vmatpush3.msra.mxu0 %v1761_v16 }
 0x13d   : > { %1218 = vmatprep.subr.mxu1 %v1767_v17  ;;  %1260 = vmatprep.subr.mxu0 %v1767_v17 }
 0x13e   : > { %1219 = vmatpush3.msra.mxu1 %v1767_v17  ;;  %1261 = vmatpush3.msra.mxu0 %v1767_v17 }
 0x13f   : > { %1220 = vmatprep.subr.mxu1 %v1773_v18  ;;  %1262 = vmatprep.subr.mxu0 %v1773_v18 }
 0x140   : > { %1221 = vmatpush3.msra.mxu1 %v1773_v18  ;;  %1263 = vmatpush3.msra.mxu0 %v1773_v18 }
 0x141   : > { %1222 = vmatprep.subr.mxu1 %v1779_v19  ;;  %1264 = vmatprep.subr.mxu0 %v1779_v19 }
 0x142   : > { %1223 = vmatpush3.msra.mxu1 %v1779_v19  ;;  %1265 = vmatpush3.msra.mxu0 %v1779_v19 }
 0x143   : > { %1224 = vmatprep.subr.mxu1 %v1785_v20  ;;  %1266 = vmatprep.subr.mxu0 %v1785_v20 }
 0x144   : > { %1225 = vmatpush3.msra.mxu1 %v1785_v20  ;;  %1267 = vmatpush3.msra.mxu0 %v1785_v20 }
 0x145   : > { %1226 = vmatprep.subr.mxu1 %v1795_v21  ;;  %1268 = vmatprep.subr.mxu0 %v1795_v21 }
 0x146   : > { %1227 = vmatpush3.msra.mxu1 %v1795_v21  ;;  %1269 = vmatpush3.msra.mxu0 %v1795_v21 }
 0x1e1   : > { %v1146_v30 = vpop.f32.mrf.mxu1  ;;  %v1188_v31 = vpop.f32.mrf.mxu0 }
 0x1e2   : > { %397 = vst [vmem:[%s216_s23 + $0x8] sm:$0xff] %v1146_v30  ;;  %994 = vst [vmem:[%s216_s23 + $0x18] sm:$0xff] %v1188_v31 }
 0x1e3   : > { %v387_v32 = vpop.f32.mrf.mxu1  ;;  %v542_v33 = vpop.f32.mrf.mxu0 }
 0x1e4   : > { %396 = vst [vmem:[%s216_s23] sm:$0xff] %v387_v32  ;;  %993 = vst [vmem:[%s216_s23 + $0x10] sm:$0xff] %v542_v33 }
 0x1e6   : > { %v1195_v34 = vpop.f32.mrf.mxu1  ;;  %v1237_v35 = vpop.f32.mrf.mxu0 }
 0x1e8   : > { %v623_v36 = vpop.f32.mrf.mxu1  ;;  %v779_v37 = vpop.f32.mrf.mxu0 }
 0x1e9   : > { %1228 = vmatprep.mubr.f32.mxu1 %v623_v36  ;;  %1270 = vmatprep.mubr.f32.mxu0 %v779_v37 }
 0x1ea   : > { %1229 = vmatmul.mubr.f32.vlgmr.msra.gmra.mxu1 %v1195_v34  ;;  %1271 = vmatmul.mubr.f32.vlgmr.msra.gmra.mxu0 %v1237_v35 }
 0x2aa   : > { %v1230_v38 = vpop.f32.mrf.mxu1  ;;  %v1272_v39 = vpop.f32.mrf.mxu0 }
 0x2ab   : > { %1000 = vst [vmem:[%s216_s23 + $0x28] sm:$0xff] %v1230_v38  ;;  %1006 = vst [vmem:[%s216_s23 + $0x38] sm:$0xff] %v1272_v39 }
 0x2ac   : > { %v698_v40 = vpop.f32.mrf.mxu1  ;;  %v854_v41 = vpop.f32.mrf.mxu0 }
 0x2ad   : > { %999 = vst [vmem:[%s216_s23 + $0x20] sm:$0xff] %v698_v40  ;;  %1005 = vst [vmem:[%s216_s23 + $0x30] sm:$0xff] %v854_v41 }
 0x2ae   : > { %1437 = shalt.err (!%p1434_p0)
}
 0x2af   : > { %s1438_s27 = scalar_lea.hbm %s1884_s19, 1024  ;;  %s1442_s6 = scalar_lea.hbm %s1932_s3, 2048 }
 0x2b0   : > { %p1439_p2 = scmp.ne.s32.totalorder %s1884_s19, %s1438_s27  ;;  %p1443_p6 = scmp.lt.s32.totalorder %s1884_s19, %s1932_s3 }
 0x2b1   : > { %p1444_p13 = scmp.lt.s32.totalorder %s1442_s6, %s1438_s27 }
 0x2b2   : > { %p1440_p3 = pnand %p1439_p2, %p1950_p11 }
 0x2b3   : > { %p1445_p8 = por %p1444_p13, %p1443_p6 }
 0x2b4   : > { %p1441_p7 = pneg %p1440_p3 }
 0x2b6   : > { %p1446_p4 = pnand %p1445_p8, %p1441_p7 }
 0x2b8   : > { %1449 = shalt.err (!%p1446_p4)
}
 0x2b9   : > { %s1504_s10 = smov 128   ;;  %s1505_s8 = smov 8  }
 0x2ba   : > { %1283 = dma.vmem_to_hbm [thread:$0]  (%p1950_p11), %s1879_s9, 1024, %s1884_s19, %s1888_s16, %s1504_s10, %s1504_s10, %s1505_s8  }
 0x2bb PF: > { %s896_s23 = sand.u32 1, %s1484_s12   ;;  %p1951_p12 = scmp.ne.s32.totalorder %s1940_s25, 0 }
 0x2bc   : > { %p1952_p9 = scmp.ge.s32.totalorder %s1496_s15, 2  ;;  %s897_s11 = scalar_lea.sflag [#allocation4], %s896_s23 }
 0x2be   : > { %p1297_p10 = pnand %p1952_p9, %p1951_p12 }
 0x2c0   : > { %p1298_p1 = pneg %p1297_p10 }
 0x2c2   : > { %1479 = dma.done.wait (%p1298_p1), %s897_s11, 1024  }
 0x2c3   : > { %1481 = vsyncadd (%p1298_p1), %s897_s11, 4294966272  ;;  %p15_p5 = scmp.ge.s32.totalorder %s1551_s18, 4   ;;  %s1953_s12 = smov %s1488_s13 }
 0x2c4   : > { %s1954_s13 = smov %s1492_s14  ;;  %s1955_s14 = smov %s1563_s21 }
 0x2c5   : > { %s1956_s15 = smov %s1551_s18  ;;  %17 = sbr.rel (!%p15_p5) target bundleno = 5 (0x5), region = 90 }
 0x2ca   :  { %902 = vsyncpa [#allocation3], 1 }
 0x2cb   :  { %904 = vsyncpa [#allocation3 + $0x1], 1 }
 0x2cc   :  { %905 = vsyncpa [#allocation6], 1 }
 0x2cd   :  { %906 = vsyncpa [#allocation4], 1 }
 0x2ce   :  { %908 = vsyncpa [#allocation4 + $0x1], 1 }

</bundles_post_ra>
